<compile_context>
chip_gen: v7x
topology: tpu7x:2x2x1
jax: 0.10.0
libtpu: 0.0.40
codegen_flags: <defaults>
</compile_context>

<pallas_src>
import functools

import jax
import jax.numpy as jnp
from jax.experimental import pallas as pl
from jax.experimental.pallas import tpu as pltpu


# Safe on all generations: < 64 MiB physical VMEM on v7x, well under 128 MiB on
# v5e/v6e; above the 16/32 MiB scoped defaults so big tiles are not capped.
_VMEM_LIMIT_BYTES = 48 * 1024 * 1024


def _pick_hw_tile(C, HW, *, itemsize=4, bufs_per_lane=4, max_lanes=8192,
                  budget_bytes=16 * 1024 * 1024):
    """Largest multiple-of-128 HW tile that divides HW, fits the double-buffered
    VMEM budget (`bufs_per_lane` tile-sized buffers), and is <= max_lanes.
    Falls back to the full HW extent when HW is not a multiple of 128."""
    if HW % 128 != 0:
        # TODO(synk): pad HW to a multiple of 128 for very large non-aligned
        # spatial extents instead of falling back to a single full-HW tile.
        return HW
    per_lane_bytes = bufs_per_lane * C * itemsize
    cap = max(128, (budget_bytes // per_lane_bytes) // 128 * 128)
    cap = min(cap, max_lanes, HW)
    tile = 128
    t = 256
    while t <= cap:
        if HW % t == 0:
            tile = t
        t += 128
    return tile


def _pool_excite_kernel(x_ref, w1_ref, b1_ref, w2_ref, b2_ref, s_ref, acc_ref,
                        *, inv_hw):
    """Grid (N, T). Accumulates spatial sums over T (arbitrary axis), then on the
    last tile runs the tiny excitation MLP and writes the gate s:(1, C, 1)."""
    t = pl.program_id(1)

    @pl.when(t == 0)
    def _init():
        acc_ref[...] = jnp.zeros_like(acc_ref)

    # Partial sum over this spatial (lane) tile: (1, C, HW_TILE) -> (1, C).
    acc_ref[...] += jnp.sum(x_ref[...].astype(jnp.float32), axis=-1)

    @pl.when(t == pl.num_programs(1) - 1)
    def _finalize():
        pooled = acc_ref[...] * inv_hw                                  # (1, C)
        h = jnp.dot(pooled, w1_ref[...],
                    preferred_element_type=jnp.float32) + b1_ref[...]   # (1, Cr)
        h = jnp.maximum(h, 0.0)                                         # ReLU
        z = jnp.dot(h, w2_ref[...],
                    preferred_element_type=jnp.float32) + b2_ref[...]   # (1, C)
        s_ref[...] = jax.nn.sigmoid(z)[:, :, None].astype(s_ref.dtype)  # (1, C, 1)


def _scale_kernel(x_ref, s_ref, o_ref):
    """Grid (N, T), both axes parallel: out = x * s (broadcast over lanes)."""
    o_ref[...] = x_ref[...] * s_ref[...].astype(x_ref.dtype)


def se_module_forward(x_nchw, w1, b1, w2, b2, *, hw_tile=None,
                      vmem_limit_bytes=_VMEM_LIMIT_BYTES):
    """x_nchw: (N, C, H, W) float32.
    w1: (C, Cr)  = fc1.weight.T   b1: (1, Cr)
    w2: (Cr, C)  = fc2.weight.T   b2: (1, C)
    """
    N, C, H, W = x_nchw.shape
    Cr = w1.shape[1]
    HW = H * W
    x = x_nchw.reshape(N, C, HW)                 # contiguous reshape: free
    itemsize = x.dtype.itemsize

    # Pass 1 only double-buffers the input tile -> can afford bigger lanes.
    if hw_tile is None:
        hw_tile_pool = _pick_hw_tile(C, HW, itemsize=itemsize, bufs_per_lane=2)
        hw_tile_scale = _pick_hw_tile(C, HW, itemsize=itemsize, bufs_per_lane=4)
    else:
        hw_tile_pool = hw_tile_scale = hw_tile
    assert HW % hw_tile_pool == 0, (HW, hw_tile_pool)
    assert HW % hw_tile_scale == 0, (HW, hw_tile_scale)
    T_pool = HW // hw_tile_pool
    T_scale = HW // hw_tile_scale
    inv_hw = 1.0 / float(HW)

    # ---- Pass 1: pooled mean + excitation MLP -> gate s of shape (N, C, 1) ----
    s = pl.pallas_call(
        functools.partial(_pool_excite_kernel, inv_hw=inv_hw),
        out_shape=jax.ShapeDtypeStruct((N, C, 1), jnp.float32),
        grid_spec=pltpu.PrefetchScalarGridSpec(
            num_scalar_prefetch=0,
            grid=(N, T_pool),
            in_specs=[
                pl.BlockSpec((1, C, hw_tile_pool), lambda n, t: (n, 0, t)),
                pl.BlockSpec((C, Cr), lambda n, t: (0, 0)),
                pl.BlockSpec((1, Cr), lambda n, t: (0, 0)),
                pl.BlockSpec((Cr, C), lambda n, t: (0, 0)),
                pl.BlockSpec((1, C), lambda n, t: (0, 0)),
            ],
            out_specs=pl.BlockSpec((1, C, 1), lambda n, t: (n, 0, 0)),
            scratch_shapes=[pltpu.VMEM((1, C), jnp.float32)],
        ),
        compiler_params=pltpu.CompilerParams(
            dimension_semantics=("parallel", "arbitrary"),
            vmem_limit_bytes=vmem_limit_bytes,
        ),
    )(x, w1, b1, w2, b2)

    # ---- Pass 2: memory-bound streaming scale, fully pipelined & parallel ----
    out = pl.pallas_call(
        _scale_kernel,
        out_shape=jax.ShapeDtypeStruct((N, C, HW), x.dtype),
        grid_spec=pltpu.PrefetchScalarGridSpec(
            num_scalar_prefetch=0,
            grid=(N, T_scale),
            in_specs=[
                pl.BlockSpec((1, C, hw_tile_scale), lambda n, t: (n, 0, t)),
                pl.BlockSpec((1, C, 1), lambda n, t: (n, 0, 0)),
            ],
            out_specs=pl.BlockSpec((1, C, hw_tile_scale), lambda n, t: (n, 0, t)),
        ),
        compiler_params=pltpu.CompilerParams(
            dimension_semantics=("parallel", "parallel"),
            vmem_limit_bytes=vmem_limit_bytes,
        ),
    )(x, s)

    return out.reshape(N, C, H, W)


def reference_se(x, w1, b1, w2, b2):
    pooled = jnp.mean(x, axis=(2, 3))                       # (N, C)
    h = jnp.maximum(pooled @ w1 + b1, 0.0)                  # (N, Cr)
    s = jax.nn.sigmoid(h @ w2 + b2)                         # (N, C)
    return x * s[:, :, None, None]


def _make_inputs(key, N, C, H, W, reduction):
    Cr = C // reduction
    k_x, k_w1, k_b1, k_w2, k_b2 = jax.random.split(key, 5)
    x = jax.random.normal(k_x, (N, C, H, W), dtype=jnp.float32)
    # 1x1 Conv2d weights stored pre-transposed so the kernel does plain
    # (1,C)@(C,Cr) / (1,Cr)@(Cr,C) matmuls.
    w1 = jax.random.normal(k_w1, (C, Cr), dtype=jnp.float32) * 0.1   # fc1.weight.T
    b1 = jax.random.normal(k_b1, (1, Cr), dtype=jnp.float32) * 0.1   # fc1.bias
    w2 = jax.random.normal(k_w2, (Cr, C), dtype=jnp.float32) * 0.1   # fc2.weight.T
    b2 = jax.random.normal(k_b2, (1, C), dtype=jnp.float32) * 0.1    # fc2.bias
    return x, w1, b1, w2, b2


if __name__ == "__main__":
    key = jax.random.PRNGKey(0)

    # Small shapes consistent with SEModule(channels=32, reduction=16).
    N, C, H, W = 2, 32, 16, 16
    x, w1, b1, w2, b2 = _make_inputs(key, N, C, H, W, reduction=16)
    ref = reference_se(x, w1, b1, w2, b2)

    # Default auto-picked tiles (single HW tile at this small demo shape).
    out = jax.block_until_ready(se_module_forward(x, w1, b1, w2, b2))
    assert out.shape == (N, C, H, W)
    assert jnp.allclose(out, ref, atol=1e-5, rtol=1e-5)

    # Force a multi-tile grid (HW=256 -> 2 tiles) to exercise the accumulator
    # (pl.when init/finalize) and resident-gate broadcast paths.
    out_mt = jax.block_until_ready(
        se_module_forward(x, w1, b1, w2, b2, hw_tile=128))
    assert jnp.allclose(out_mt, ref, atol=1e-5, rtol=1e-5)

    # A second shape with larger spatial extent to exercise auto tile picking
    # with per-pass (read-only vs read+write) tile sizes.
    N2, C2, H2, W2 = 2, 64, 32, 32
    x2, w1b, b1b, w2b, b2b = _make_inputs(jax.random.PRNGKey(1),
                                          N2, C2, H2, W2, reduction=16)
    ref2 = reference_se(x2, w1b, b1b, w2b, b2b)
    out2 = jax.block_until_ready(se_module_forward(x2, w1b, b1b, w2b, b2b))
    assert jnp.allclose(out2, ref2, atol=1e-5, rtol=1e-5)

    print("KERNEL_OK")
</pallas_src>

<mosaic_0001>
module attributes {stable_mosaic.version = 11 : i64} {
  func.func @_pool_excite_kernel(%arg0: i32, %arg1: i32, %arg2: memref<1x32x256xf32, #tpu.memory_space<vmem>>, %arg3: memref<32x2xf32, #tpu.memory_space<vmem>>, %arg4: memref<1x2xf32, #tpu.memory_space<vmem>>, %arg5: memref<2x32xf32, #tpu.memory_space<vmem>>, %arg6: memref<1x32xf32, #tpu.memory_space<vmem>>, %arg7: memref<1x32x1xf32, #tpu.memory_space<vmem>>, %arg8: memref<1x32xf32, #tpu.memory_space<vmem>>) attributes {dimension_semantics = [#tpu.dimension_semantics<parallel>, #tpu.dimension_semantics<arbitrary>], iteration_bounds = array<i64: 2, 1>, scalar_prefetch = 0 : i64, scratch_operands = 1 : i64, tpu.core_type = #tpu.core_type<tc>, window_params = [{transform_indices = @transform_0, window_bounds = array<i64: 1, 32, 256>}, {pipeline_mode = #tpu.pipeline_mode<synchronous>, transform_indices = @transform_1, window_bounds = array<i64: 32, 2>}, {pipeline_mode = #tpu.pipeline_mode<synchronous>, transform_indices = @transform_2, window_bounds = array<i64: 1, 2>}, {pipeline_mode = #tpu.pipeline_mode<synchronous>, transform_indices = @transform_3, window_bounds = array<i64: 2, 32>}, {pipeline_mode = #tpu.pipeline_mode<synchronous>, transform_indices = @transform_4, window_bounds = array<i64: 1, 32>}, {transform_indices = @transform_5, window_bounds = array<i64: 1, 32, 1>}]} {
    %c0_i32 = arith.constant 0 : i32
    %0 = arith.cmpi eq, %arg1, %c0_i32 : i32
    %1 = arith.extui %0 : i1 to i32
    %c0_i32_0 = arith.constant 0 : i32
    %2 = arith.cmpi ne, %1, %c0_i32_0 : i32
    scf.if %2 {
      %cst_9 = arith.constant 0.000000e+00 : f32
      %11 = vector.broadcast %cst_9 : f32 to vector<1x32xf32>
      %c0_10 = arith.constant 0 : index
      %c0_11 = arith.constant 0 : index
      %12 = vector.load %arg8[%c0_10, %c0_11] : memref<1x32xf32, #tpu.memory_space<vmem>>, vector<1x32xf32>
      tpu.vector_store %arg8[%c0_10, %c0_11], %11 {strides = array<i32>} : memref<1x32xf32, #tpu.memory_space<vmem>>, vector<1x32xf32>,
    } else {
    }
    %c0 = arith.constant 0 : index
    %c0_1 = arith.constant 0 : index
    %3 = vector.load %arg8[%c0, %c0_1] : memref<1x32xf32, #tpu.memory_space<vmem>>, vector<1x32xf32>
    %c0_2 = arith.constant 0 : index
    %c0_3 = arith.constant 0 : index
    %c0_4 = arith.constant 0 : index
    %4 = vector.load %arg2[%c0_2, %c0_3, %c0_4] : memref<1x32x256xf32, #tpu.memory_space<vmem>>, vector<1x32x256xf32>
    %cst = arith.constant dense<0.000000e+00> : vector<1x32xf32>
    %5 = vector.multi_reduction <add>, %4, %cst [2] : vector<1x32x256xf32> to vector<1x32xf32>
    %6 = arith.addf %3, %5 : vector<1x32xf32>
    %c0_5 = arith.constant 0 : index
    %c0_6 = arith.constant 0 : index
    %7 = vector.load %arg8[%c0_5, %c0_6] : memref<1x32xf32, #tpu.memory_space<vmem>>, vector<1x32xf32>
    tpu.vector_store %arg8[%c0_5, %c0_6], %6 {strides = array<i32>} : memref<1x32xf32, #tpu.memory_space<vmem>>, vector<1x32xf32>,
    %c0_i32_7 = arith.constant 0 : i32
    %8 = arith.cmpi eq, %arg1, %c0_i32_7 : i32
    %9 = arith.extui %8 : i1 to i32
    %c0_i32_8 = arith.constant 0 : i32
    %10 = arith.cmpi ne, %9, %c0_i32_8 : i32
    scf.if %10 {
      %c0_9 = arith.constant 0 : index
      %c0_10 = arith.constant 0 : index
      %11 = vector.load %arg8[%c0_9, %c0_10] : memref<1x32xf32, #tpu.memory_space<vmem>>, vector<1x32xf32>
      %cst_11 = arith.constant 3.906250e-03 : f32
      %12 = vector.broadcast %cst_11 : f32 to vector<1x32xf32>
      %13 = arith.mulf %11, %12 : vector<1x32xf32>
      %c0_12 = arith.constant 0 : index
      %c0_13 = arith.constant 0 : index
      %14 = vector.load %arg3[%c0_12, %c0_13] : memref<32x2xf32, #tpu.memory_space<vmem>>, vector<32x2xf32>
      %cst_14 = arith.constant dense<0.000000e+00> : vector<1x2xf32>
      %15 = tpu.matmul %13, %14, %cst_14 {dimension_numbers = #tpu.dot_dimension_numbers<[1], [0], [0], [1], [0, 0, 1, 1], [], []>} : vector<1x32xf32>, vector<32x2xf32>, vector<1x2xf32> -> vector<1x2xf32>
      %c0_15 = arith.constant 0 : index
      %c0_16 = arith.constant 0 : index
      %16 = vector.load %arg4[%c0_15, %c0_16] : memref<1x2xf32, #tpu.memory_space<vmem>>, vector<1x2xf32>
      %17 = arith.addf %15, %16 : vector<1x2xf32>
      %cst_17 = arith.constant 0.000000e+00 : f32
      %18 = vector.broadcast %cst_17 : f32 to vector<1x2xf32>
      %19 = arith.maximumf %17, %18 : vector<1x2xf32>
      %c0_18 = arith.constant 0 : index
      %c0_19 = arith.constant 0 : index
      %20 = vector.load %arg5[%c0_18, %c0_19] : memref<2x32xf32, #tpu.memory_space<vmem>>, vector<2x32xf32>
      %cst_20 = arith.constant dense<0.000000e+00> : vector<1x32xf32>
      %21 = tpu.matmul %19, %20, %cst_20 {dimension_numbers = #tpu.dot_dimension_numbers<[1], [0], [0], [1], [0, 0, 1, 1], [], []>} : vector<1x2xf32>, vector<2x32xf32>, vector<1x32xf32> -> vector<1x32xf32>
      %c0_21 = arith.constant 0 : index
      %c0_22 = arith.constant 0 : index
      %22 = vector.load %arg6[%c0_21, %c0_22] : memref<1x32xf32, #tpu.memory_space<vmem>>, vector<1x32xf32>
      %23 = arith.addf %21, %22 : vector<1x32xf32>
      %24 = arith.negf %23 : vector<1x32xf32>
      %25 = math.exp %24 : vector<1x32xf32>
      %cst_23 = arith.constant 1.000000e+00 : f32
      %26 = vector.broadcast %cst_23 : f32 to vector<1x32xf32>
      %27 = arith.addf %26, %25 : vector<1x32xf32>
      %28 = arith.divf %26, %27 : vector<1x32xf32>
      %29 = vector.shape_cast %28 : vector<1x32xf32> to vector<1x32x1xf32>
      %c0_24 = arith.constant 0 : index
      %c0_25 = arith.constant 0 : index
      %c0_26 = arith.constant 0 : index
      %30 = vector.load %arg7[%c0_24, %c0_25, %c0_26] : memref<1x32x1xf32, #tpu.memory_space<vmem>>, vector<1x32x1xf32>
      tpu.vector_store %arg7[%c0_24, %c0_25, %c0_26], %29 {strides = array<i32>} : memref<1x32x1xf32, #tpu.memory_space<vmem>>, vector<1x32x1xf32>,
    } else {
    }
    return
  }
  func.func @transform_0(%arg0: i32, %arg1: i32) -> (i32, i32, i32) {
    %c0_i32 = arith.constant 0 : i32
    %c0_i32_0 = arith.constant 0 : i32
    return %arg0, %c0_i32, %arg1 : i32, i32, i32
  }
  func.func @transform_1(%arg0: i32, %arg1: i32) -> (i32, i32) {
    %c0_i32 = arith.constant 0 : i32
    %c0_i32_0 = arith.constant 0 : i32
    %c0_i32_1 = arith.constant 0 : i32
    return %c0_i32, %c0_i32_0 : i32, i32
  }
  func.func @transform_2(%arg0: i32, %arg1: i32) -> (i32, i32) {
    %c0_i32 = arith.constant 0 : i32
    %c0_i32_0 = arith.constant 0 : i32
    %c0_i32_1 = arith.constant 0 : i32
    return %c0_i32, %c0_i32_0 : i32, i32
  }
  func.func @transform_3(%arg0: i32, %arg1: i32) -> (i32, i32) {
    %c0_i32 = arith.constant 0 : i32
    %c0_i32_0 = arith.constant 0 : i32
    %c0_i32_1 = arith.constant 0 : i32
    return %c0_i32, %c0_i32_0 : i32, i32
  }
  func.func @transform_4(%arg0: i32, %arg1: i32) -> (i32, i32) {
    %c0_i32 = arith.constant 0 : i32
    %c0_i32_0 = arith.constant 0 : i32
    %c0_i32_1 = arith.constant 0 : i32
    return %c0_i32, %c0_i32_0 : i32, i32
  }
  func.func @transform_5(%arg0: i32, %arg1: i32) -> (i32, i32, i32) {
    %c0_i32 = arith.constant 0 : i32
    %c0_i32_0 = arith.constant 0 : i32
    %c0_i32_1 = arith.constant 0 : i32
    return %arg0, %c0_i32, %c0_i32_0 : i32, i32, i32
  }
}

</mosaic_0001>

<bundles_post_ra>
// kernel: tpu_custom_call.1
= control target key start
LH: loop header
LB: loop body
LE: loop exit
PB: predicated region body
PF: predicated region fallthrough
CT: control target
= control target key end

     0   :  { %10 = vsyncpa [#allocation4], 0  ;;  %s1424_s0 = inlined_call_operand.hbm [shape: f32[2,32,256], index: 0, kind: input, shape index: {}]   ;;  %s1425_s1 = inlined_call_operand.vmem [shape: f32[32,2], index: 1, kind: input, shape index: {}]   ;;  %s1426_s2 = inlined_call_operand.vmem [shape: f32[1,2], index: 2, kind: input, shape index: {}]   ;;  %s1427_s3 = inlined_call_operand.vmem [shape: f32[2,32], index: 3, kind: input, shape index: {}]   ;;  %s1428_s4 = inlined_call_operand.vmem [shape: f32[1,32], index: 4, kind: input, shape index: {}]   ;;  %s1429_s5 = inlined_call_operand.vmem [shape: f32[2,32,1], index: 5, kind: output, shape index: {}]  }
   0x1   :  { %12 = vsyncpa [#allocation4 + $0x1], 0  ;;  %s1183_s18 = smov 0   ;;  %s1185_s19 = smov 0  }
   0x2   :  { %s1187_s20 = smov 0   ;;  %s1189_s21 = smov 0  }
   0x3   :  { %s1191_s22 = smov 0   ;;  %s1193_s23 = smov 0  }
   0x4 LB: > { %s947_s24 = sadd.s32 4294967295, %s1143_s23   ;;  %s30_s25 = sadd.s32 1, %s1139_s22  ;;  %s1143_s23 = sphi %s1193_s23, %s18_s23   ;;  %s1139_s22 = sphi %s1191_s22, %s1437_s22   ;;  %s1135_s21 = sphi %s1189_s21, %s1436_s21   ;;  %s1131_s20 = sphi %s1187_s20, %s1435_s20   ;;  %s1127_s19 = sphi %s1185_s19, %s1434_s19   ;;  %s1123_s18 = sphi %s1183_s18, %s1433_s18  }
   0x5   : > { %p32_p0 = scmp.ge.s32.totalorder %s30_s25, 2  ;;  %s39_s26 = sadd.s32 1, %s1131_s20 }
   0x6   : > { %p46_p1 = scmp.ne.s32.totalorder %s1131_s20, %s1127_s19  ;;  %p47_p2 = scmp.eq.s32.totalorder %s1143_s23, 0 }
   0x7   : > { %s1439_s25 = smov (%p32_p0, %s30_s25), 0  ;;  %p52_p4 = scmp.ne.s32.totalorder %s1127_s19, %s1123_s18 }
   0x8   : > { %p1219_p3 = por %p47_p2, %p46_p1  ;;  %s34_s28 = ssub.s32 %s1139_s22, %s1439_s25 }
   0x9   : > { %p53_p5 = scmp.eq.s32.totalorder %s947_s24, 0  ;;  %p37_p6 = scmp.eq.s32.totalorder %s34_s28, 0 }
   0xa   : > { %p1001_p8 = scmp.lt.s32.totalorder %s1143_s23, 2  ;;  %s198_s6 = sand.u32 1, %s1131_s20  }
   0xb   : > { %p1226_p7 = por %p53_p5, %p52_p4  ;;  %s964_s7 = sshll.u32 %s1139_s22, 10 }
   0xc   : > { %s1232_s30 = scalar_select %p37_p6, %s1131_s20, %s39_s26  }
   0xd   : > { %s951_s8 = sshll.u32 %s198_s6, 6  ;;  %s1239_s11 = scalar_lea.hbm %s1424_s0, %s964_s7 }
   0xe   : > { %s202_s12 = scalar_lea.vmem [#allocation3], %s951_s8  ;;  %p1243_p9 = pnand %p1001_p8, %p1219_p3 }
   0xf   : > { %s211_s13 = sshll.u32 %s202_s12, 4  ;;  %s1249_s15 = scalar_lea.sflag [#allocation4], %s198_s6  ;;  %s1247_s13 = int_to_ptr.vmem [resolvable:$true] %s211_s13 }
  0x10   : > { %s1063_s16 = scalar_lea.hbm %s1239_s11, 1024  ;;  %p1065_p11 = pneg %p1243_p9 }
  0x11   : > { %p1064_p10 = scmp.ne.s32.totalorder %s1239_s11, %s1063_s16  ;;  %s1068_s24 = scalar_lea.hbm %s1424_s0, 2048 }
  0x12   : > { %p1069_p0 = scmp.lt.u32.totalorder %s1239_s11, %s1424_s0  ;;  %p1070_p1 = scmp.lt.u32.totalorder %s1068_s24, %s1063_s16 }
  0x13   : > { %p1066_p12 = pnand %p1065_p11, %p1064_p10  ;;  %p1072_p3 = scmp.lt.u32.totalorder %s1063_s16, %s1239_s11 }
  0x14   : > { %p1071_p2 = por %p1070_p1, %p1069_p0 }
  0x15   : > { %p1067_p13 = pneg %p1066_p12 }
  0x16   : > { %p1073_p4 = por %p1072_p3, %p1071_p2 }
  0x18   : > { %p1074_p5 = pnand %p1073_p4, %p1067_p13 }
  0x1a   : > { %1077 = shalt.err (!%p1074_p5)
}
  0x1b   : > { %s1078_s28 = scalar_lea.vmem %s1247_s13, 1024  ;;  %s1145_s6 = smov [#allocation3]  }
  0x1c   : > { %p1079_p6 = scmp.ne.s32.totalorder %s1247_s13, %s1078_s28  ;;  %s1083_s7 = sshll.u32 %s1145_s6, 4  ;;  %s1084_s7 = int_to_ptr.vmem [resolvable:$false] %s1083_s7 }
  0x1d   : > { %s1085_s8 = scalar_lea.vmem %s1084_s7, 2048  ;;  %p1086_p12 = scmp.lt.s32.totalorder %s1247_s13, %s1084_s7 }
  0x1e   : > { %p1081_p8 = pnand %p1079_p6, %p1065_p11  ;;  %p1087_p0 = scmp.lt.s32.totalorder %s1085_s8, %s1078_s28 }
  0x20   : > { %p1082_p10 = pneg %p1081_p8  ;;  %p1088_p1 = por %p1087_p0, %p1086_p12 }
  0x22   : > { %p1089_p2 = pnand %p1088_p1, %p1082_p10 }
  0x24   : > { %1092 = shalt.err (!%p1089_p2)
}
  0x25   : > { %s1146_s9 = smov 256   ;;  %s1147_s10 = smov 16  }
  0x26   : > { %1000 = dma.hbm_to_vmem [thread:$0]  (!%p1243_p9), %s1239_s11, 1024, %s1247_s13, %s1249_s15, %s1146_s9, %s1146_s9, %s1147_s10  }
  0x27   : > { %p954_p11 = scmp.ge.s32.totalorder %s1143_s23, 1  ;;  %p219_p13 = scmp.lt.s32.totalorder %s1143_s23, 3 }
  0x29   : > { %p220_p3 = pnand %p954_p11, %p219_p13 }
  0x2a   : > { %s225_s12 = sand.u32 (!%p220_p3), 1, %s1127_s19  }
  0x2b   : > { %223 = sbr.rel (%p220_p3) target bundleno = 957 (0x3bd), region = 40  ;;  %s955_s16 = sshll.u32 (!%p220_p3), %s225_s12, 6 }
  0x2c   : > { %s226_s17 = scalar_lea.sflag (!%p220_p3), [#allocation4], %s225_s12  ;;  %s229_s18 = scalar_lea.vmem (!%p220_p3), [#allocation3], %s955_s16 }
  0x32   : > { %1118 = dma.done.wait (%p1226_p7), %s226_s17, 1024  }
  0x33   : > { %1120 = vsyncadd (%p1226_p7), %s226_s17, 4294966272  ;;  %v269_v0 = vld [vmem:[%s229_s18] sm:$0xff]  ;;  %v270_v1 = vld [vmem:[%s229_s18 + $0x8] sm:$0xff]  ;;  %v1148_v12 = vmov 0   ;;  %v293_v13 = vlaneseq  ;;  %v1149_v14 = vmov 1966171168  }
  0x34   : > { %v271_v2 = vld [vmem:[%s229_s18 + $0x10] sm:$0xff]  ;;  %v277_v3 = vadd.f32 %v270_v1, %v269_v0  ;;  %v272_v4 = vld [vmem:[%s229_s18 + $0x18] sm:$0xff]  ;;  %v273_v5 = vld [vmem:[%s229_s18 + $0x20] sm:$0xff]  ;;  %1057 = vset.pattern.permute.xlu0 %v1148_v12  ;;  %1058 = vset.pattern.permute.xlu1 %v1148_v12  ;;  %v426_v15 = vunpack.c.l.s4 %v1149_v14  ;;  %vm266_vm0 = vcmask 253952   ;;  %vm1152_vm1 = vmmov 0   ;;  %p257_p7 = scmp.lt.s32.totalorder %s1135_s21, 1 }
  0x35   : > { %v274_v6 = vld [vmem:[%s229_s18 + $0x28] sm:$0xff]  ;;  %v275_v8 = vld [vmem:[%s229_s18 + $0x30] sm:$0xff]  ;;  %v276_v9 = vld [vmem:[%s229_s18 + $0x38] sm:$0xff]  ;;  %v280_v10 = vadd.f32 %v272_v4, %v271_v2  ;;  %v1285_v16 = vshrl.u32 %v293_v13, 7  ;;  %vm640_vm2 = vcmask 130112   ;;  %vm647_vm3 = vcmask 195712  }
  0x36   : > { %v283_v7 = vadd.f32 %v274_v6, %v273_v5  ;;  %278 = vadd.xlane.f32.xlu0 %v277_v3  ;;  %v286_v11 = vadd.f32 %v276_v9, %v275_v8  ;;  %v427_v17 = vunpack.c.0.s8 %v426_v15  ;;  %vm654_vm4 = vcmask 261312   ;;  %s1441_s21 = smov (!%p257_p7, %s1135_s21), 1 }
  0x37   : > { %v1288_v18 = vsub.s32 0, %v1285_v16  ;;  %v1291_v19 = vsub.s32 1, %v1285_v16  ;;  %v1294_v20 = vsub.s32 2, %v1285_v16  ;;  %v1297_v21 = vsub.s32 3, %v1285_v16  ;;  %s965_s12 = sshll.u32 %s1441_s21, 5 }
  0x38   : > { %284 = vadd.xlane.f32.xlu1 %v283_v7  ;;  %v1300_v22 = vsub.s32 4, %v1285_v16  ;;  %v1303_v23 = vsub.s32 5, %v1285_v16  ;;  %v1306_v24 = vsub.s32 6, %v1285_v16  ;;  %v1309_v25 = vsub.s32 7, %v1285_v16  ;;  %s261_s18 = scalar_lea.vmem %s1429_s5, %s965_s12 }
  0x39   : > { %v1312_v27 = vsub.s32 %v427_v17, %v1285_v16  ;;  %vm684_vm5 = vcmask 261120   ;;  %vm765_vm6 = vcmask 1041408   ;;  %vm761_vm7 = vcmask 15360  }
  0x3a   : > { %281 = vadd.xlane.f32.xlu0 %v280_v10  ;;  %vm864_vm8 = vcmask 7168  }
  0x3c   : > { %287 = vadd.xlane.f32.xlu1 %v286_v11 }
  0xc3   : > { %v279_v26 = vpop.xlane.xlu0 %278 }
  0xc4   : > { %v296_v29 = vrot.slane %v279_v26, %v1288_v18  ;;  %v300_v30 = vrot.slane %v279_v26, %v1291_v19  ;;  %v304_v31 = vrot.slane %v279_v26, %v1294_v20  ;;  %v308_v32 = vrot.slane %v279_v26, %v1297_v21 }
  0xc5   : > { %v285_v28 = vpop.xlane.xlu1 %284  ;;  %v312_v33 = vrot.slane %v279_v26, %v1300_v22  ;;  %v316_v34 = vrot.slane %v279_v26, %v1303_v23  ;;  %v320_v35 = vrot.slane %v279_v26, %v1306_v24  ;;  %v324_v36 = vrot.slane %v279_v26, %v1309_v25 }
  0xc6   : > { %v421_v37 = vcombine.low %v296_v29, %v300_v30  ;;  %v422_v38 = vcombine.low %v304_v31, %v308_v32  ;;  %v360_v39 = vrot.slane %v285_v28, %v1288_v18  ;;  %v364_v40 = vrot.slane %v285_v28, %v1291_v19 }
  0xc7   : > { %v282_v41 = vpop.xlane.xlu0 %281  ;;  %v423_v42 = vcombine.low %v312_v33, %v316_v34  ;;  %v424_v43 = vcombine.low %v320_v35, %v324_v36  ;;  %v368_v44 = vrot.slane %v285_v28, %v1294_v20  ;;  %v372_v45 = vrot.slane %v285_v28, %v1297_v21 }
  0xc8   : > { %v431_v46 = vrot.slane %v421_v37, %v1312_v27  ;;  %v438_v47 = vrot.slane %v422_v38, %v1312_v27  ;;  %v328_v48 = vrot.slane %v282_v41, %v1288_v18  ;;  %v332_v49 = vrot.slane %v282_v41, %v1291_v19 }
  0xc9   : > { %v445_v50 = vrot.slane %v423_v42, %v1312_v27  ;;  %v452_v51 = vrot.slane %v424_v43, %v1312_v27  ;;  %v336_v52 = vrot.slane %v282_v41, %v1294_v20  ;;  %v340_v53 = vrot.slane %v282_v41, %v1297_v21  ;;  %v288_v2 = vpop.xlane.xlu1 %287 }
  0xca   : > { %v453_v54 = vcombine.low %v431_v46, %v438_v47  ;;  %v344_v55 = vrot.slane %v282_v41, %v1300_v22  ;;  %v348_v56 = vrot.slane %v282_v41, %v1303_v23  ;;  %v352_v57 = vrot.slane %v282_v41, %v1306_v24 }
  0xcb   : > { %v454_v58 = vcombine.low %v445_v50, %v452_v51  ;;  %v356_v59 = vrot.slane %v282_v41, %v1309_v25  ;;  %v470_v60 = vcombine.low %v328_v48, %v332_v49  ;;  %v471_v61 = vcombine.low %v336_v52, %v340_v53 }
  0xcc   : > { %v461_v62 = vrot.slane %v453_v54, %v1312_v27  ;;  %v472_v63 = vcombine.low %v344_v55, %v348_v56  ;;  %v376_v0 = vrot.slane %v285_v28, %v1300_v22  ;;  %v380_v1 = vrot.slane %v285_v28, %v1303_v23  ;;  %v679_v56 = vld [vmem:[%s1425_s1] sm:$0xff] }
  0xcd   : > { %v468_v3 = vrot.slane %v454_v58, %v1312_v27  ;;  %v473_v4 = vcombine.low %v352_v57, %v356_v59  ;;  %v480_v5 = vrot.slane %v470_v60, %v1312_v27  ;;  %v487_v6 = vrot.slane %v471_v61, %v1312_v27  ;;  %v680_v57 = vld [vmem:[%s1425_s1 + $0x8] sm:$0xff]  ;;  %v681_v58 = vld [vmem:[%s1425_s1 + $0x10] sm:$0xff]  ;;  %v682_v61 = vld [vmem:[%s1425_s1 + $0x18] sm:$0xff] }
  0xce   : > { %v494_v7 = vrot.slane %v472_v63, %v1312_v27  ;;  %v384_v8 = vrot.slane %v285_v28, %v1306_v24  ;;  %v388_v9 = vrot.slane %v285_v28, %v1309_v25  ;;  %v519_v10 = vcombine.low %v360_v39, %v364_v40 }
  0xcf   : > { %v469_v11 = vcombine.low %v461_v62, %v468_v3  ;;  %v501_v12 = vrot.slane %v473_v4, %v1312_v27  ;;  %v502_v14 = vcombine.low %v480_v5, %v487_v6  ;;  %v520_v15 = vcombine.low %v368_v44, %v372_v45 }
  0xd0   : > { %v521_v17 = vcombine.low %v376_v0, %v380_v1  ;;  %v522_v26 = vcombine.low %v384_v8, %v388_v9  ;;  %v529_v29 = vrot.slane %v519_v10, %v1312_v27  ;;  %v392_v30 = vrot.slane %v288_v2, %v1288_v18 }
  0xd1   : > { %618 = vperm.xlu0 %1057, %v469_v11   ;;  %v503_v31 = vcombine.low %v494_v7, %v501_v12  ;;  %v510_v32 = vrot.slane %v502_v14, %v1312_v27  ;;  %v536_v33 = vrot.slane %v520_v15, %v1312_v27  ;;  %v396_v28 = vrot.slane %v288_v2, %v1291_v19 }
  0xd2   : > { %v543_v34 = vrot.slane %v521_v17, %v1312_v27  ;;  %v550_v35 = vrot.slane %v522_v26, %v1312_v27  ;;  %v400_v36 = vrot.slane %v288_v2, %v1294_v20  ;;  %v404_v37 = vrot.slane %v288_v2, %v1297_v21 }
  0xd3   : > { %v517_v38 = vrot.slane %v503_v31, %v1312_v27  ;;  %v551_v39 = vcombine.low %v529_v29, %v536_v33  ;;  %v408_v40 = vrot.slane %v288_v2, %v1300_v22  ;;  %v412_v41 = vrot.slane %v288_v2, %v1303_v23 }
  0xd4   : > { %v552_v42 = vcombine.low %v543_v34, %v550_v35  ;;  %v416_v43 = vrot.slane %v288_v2, %v1306_v24  ;;  %v420_v19 = vrot.slane %v288_v2, %v1309_v25  ;;  %v568_v44 = vcombine.low %v392_v30, %v396_v28  ;;  %v759_v28 = vld [vmem:[%s1427_s3] sm:$0x3] }
  0xd5   : > { %v518_v45 = vcombine.low %v510_v32, %v517_v38  ;;  %v559_v46 = vrot.slane %v551_v39, %v1312_v27  ;;  %v569_v47 = vcombine.low %v400_v36, %v404_v37  ;;  %v570_v20 = vcombine.low %v408_v40, %v412_v41  ;;  %v683_v34 = vld [vmem:[%s1426_s2] sm:$0x1] }
  0xd6   : > { %v566_v21 = vrot.slane %v552_v42, %v1312_v27  ;;  %v571_v48 = vcombine.low %v416_v43, %v420_v19  ;;  %v578_v49 = vrot.slane %v568_v44, %v1312_v27  ;;  %v1150_v55 = vmov 0.0   ;;  %v760_v38 = vld [vmem:[%s1428_s4] sm:$0x1] }
  0xd7   : > { %621 = vperm.xlu1 %1058, %v518_v45   ;;  %v585_v22 = vrot.slane %v569_v47, %v1312_v27  ;;  %v592_v23 = vrot.slane %v570_v20, %v1312_v27  ;;  %267 = vst.msk [vmem:[#allocation2] sm:$0x1] %vm266_vm0, %v1150_v55  ;;  %984 = vmatprep.subr.mxu1 %v1150_v55  ;;  %v1151_v59 = vmov 0.0|0.0   ;;  %v630_v63 = vand.u32 127, %v293_v13 }
  0xd8   : > { %v567_v50 = vcombine.low %v559_v46, %v566_v21  ;;  %v599_v24 = vrot.slane %v571_v48, %v1312_v27  ;;  %989 = vmatprep.subr.bf16.mxu0 %v1151_v59  ;;  %v990_v60 = vpack.c.bf16 %v680_v57, %v679_v56  ;;  %v993_v62 = vpack.c.bf16 %v682_v61, %v681_v58 }
  0xd9   : > { %v600_v25 = vcombine.low %v578_v49, %v585_v22  ;;  %981 = vmatprep.mubr.msk.f32.mxu0 %vm1152_vm1, %v1150_v55  ;;  %986 = vmatprep.mubr.msk.f32.mxu1 %vm1152_vm1, %v1150_v55  ;;  %v635_v0 = vadd.s32 4294967288, %v630_v63  ;;  %v642_v1 = vadd.s32 4294967280, %v630_v63  ;;  %v649_v4 = vadd.s32 4294967272, %v630_v63 }
  0xda   : > { %v601_v51 = vcombine.low %v592_v23, %v599_v24  ;;  %991 = vmatpush3.bf16.msra.mxu0 %v990_v60  ;;  %v633_v6 = vsub.s32 %v630_v63, %v1285_v16  ;;  %985 = vmatpush3.msk.msra.mxu1 %vm765_vm6, %v759_v28 }
  0xdb   : > { %624 = vperm.xlu1 %1058, %v567_v50   ;;  %v608_v52 = vrot.slane %v600_v25, %v1312_v27  ;;  %992 = vmatprep.subr.bf16.mxu0 %v1151_v59  ;;  %v638_v3 = vsub.s32 %v635_v0, %v1285_v16  ;;  %v645_v5 = vsub.s32 %v642_v1, %v1285_v16 }
  0xdc   : > { %v615_v53 = vrot.slane %v601_v51, %v1312_v27  ;;  %v652_v10 = vsub.s32 %v649_v4, %v1285_v16 }
  0xde   : > { %v616_v54 = vcombine.low %v608_v52, %v615_v53  ;;  %994 = vmatpush3.bf16.msra.mxu0 %v993_v62  ;;  %v268_v30 = vld [vmem:[#allocation2] sm:$0x1] }
  0xe0   : > { %627 = vperm.xlu1 %1058, %v616_v54  }
 0x150   : > { %v619_v8 = vpop.permute.xlu0 %618 }
 0x151   : > { %v634_v12 = vrot.slane %v619_v8, %v633_v6 }
 0x156   : > { %v622_v2 = vpop.permute.xlu1 %621 }
 0x157   : > { %v639_v9 = vrot.slane %v622_v2, %v638_v3 }
 0x159   : > { %v641_v14 = vsel %vm640_vm2, %v639_v9, %v634_v12 }
 0x15a   : > { %v625_v7 = vpop.permute.xlu1 %624 }
 0x15b   : > { %v646_v11 = vrot.slane %v625_v7, %v645_v5 }
 0x15d   : > { %v648_v17 = vsel %vm647_vm3, %v646_v11, %v641_v14 }
 0x15f   : > { %v628_v13 = vpop.permute.xlu1 %627 }
 0x160   : > { %v653_v15 = vrot.slane %v628_v13, %v652_v10 }
 0x162   : > { %v655_v26 = vsel %vm654_vm4, %v653_v15, %v648_v17 }
 0x163   : > { %v662_v29 = vrot.slane %v655_v26, %v1312_v27 }
 0x165   : > { %v669_v31 = vrot.slane %v662_v29, %v1312_v27 }
 0x167   : > { %v671_v32 = vadd.f32 %v669_v31, %v268_v30 }
 0x169   : > { %673 = vst.msk [vmem:[#allocation2] sm:$0x1] %vm266_vm0, %v671_v32 }
 0x170   : > { %v677_v33 = vld [vmem:[#allocation2] sm:$0x1] }
 0x171   : > { %v678_v16 = vmul.f32 0.00390625, %v677_v33 }
 0x173   : > { %982 = vmatmul.mubr.msk.f32.vlgmr.msra.gmra.mrb[0].mxu0 %vm684_vm5, %v678_v16 }
 0x246   : > { %v754_v35 = vpop.f32.mrb[0].mxu0 }
 0x247   : > { %v755_v36 = vadd.f32 %v754_v35, %v683_v34  ;;  %v983_v27 = vpop.f32.mrb[1].mxu0 }
 0x249   : > { %v758_v37 = vmax.f32 %v755_v36, 0.0 }
 0x24b   : > { %987 = vmatmul.mubr.msk.f32.vlgmr.msra.gmra.mrb[0].mxu1 %vm761_vm7, %v758_v37 }
 0x31e   : > { %v835_v39 = vpop.f32.mrb[0].mxu1 }
 0x31f   : > { %v836_v40 = vadd.f32 %v835_v39, %v760_v38  ;;  %v988_v41 = vpop.f32.mrb[1].mxu1 }
 0x321   : > { %v961_v42 = vmul.f32 -1.442695, %v836_v40 }
 0x323   : > { %1059 = vpow2.f32 %v961_v42 }
 0x32d   : > { %v1060_v43 = vpop.eup %1059 }
 0x32e   : > { %v842_v19 = vadd.f32 1.0, %v1060_v43 }
 0x330   : > { %1061 = vrcp.f32 %v842_v19 }
 0x33a   : > { %v1062_v44 = vpop.eup %1061 }
 0x33b   : > { %v848_v45 = vrot.slane %v1062_v44, %v1288_v18 }
 0x33d   : > { %850 = vbcast.lane.b32.xlu1 %v848_v45, 256 }
 0x341   : > { %854 = vbcast.lane.b32.xlu1 %v848_v45, 264 }
 0x345   : > { %858 = vbcast.lane.b32.xlu1 %v848_v45, 272 }
 0x349   : > { %862 = vbcast.lane.b32.xlu1 %v848_v45, 280 }
 0x3af   : > { %v851_v46 = vpop.permute.xlu1 %850 }
 0x3b0   : > { %865 = vst.msk [vmem:[%s261_s18] sm:$0xff] %vm864_vm8, %v851_v46 }
 0x3b3   : > { %v855_v47 = vpop.permute.xlu1 %854 }
 0x3b4   : > { %866 = vst.msk [vmem:[%s261_s18 + $0x8] sm:$0xff] %vm864_vm8, %v855_v47 }
 0x3b7   : > { %v859_v20 = vpop.permute.xlu1 %858 }
 0x3b8   : > { %867 = vst.msk [vmem:[%s261_s18 + $0x10] sm:$0xff] %vm864_vm8, %v859_v20 }
 0x3bb   : > { %v863_v21 = vpop.permute.xlu1 %862 }
 0x3bc   : > { %868 = vst.msk [vmem:[%s261_s18 + $0x18] sm:$0xff] %vm864_vm8, %v863_v21 }
 0x3bd PF: > { %s18_s23 = sadd.s32 1, %s1143_s23   ;;  %s1433_s18 = smov %s1127_s19 }
 0x3be   : > { %p15_p9 = scmp.ge.s32.totalorder %s18_s23, 4   ;;  %s1434_s19 = smov %s1131_s20 }
 0x3bf   : > { %s1435_s20 = smov %s1232_s30  ;;  %s1436_s21 = smov %s1139_s22 }
 0x3c0   : > { %s1437_s22 = smov %s1439_s25  ;;  %17 = sbr.rel (!%p15_p9) target bundleno = 4 (0x4), region = 88 }
 0x3c7   :  { %890 = vsyncpa [#allocation4], 1 }
 0x3c8   :  { %892 = vsyncpa [#allocation4 + $0x1], 1 }

</bundles_post_ra>
